<compile_context>
chip_gen: v7x
topology: tpu7x:2x2x1
jax: 0.10.0
libtpu: 0.0.40
codegen_flags: <defaults>
</compile_context>

<pallas_src>
import functools

import jax
import jax.numpy as jnp
from jax.experimental import pallas as pl
from jax.experimental.pallas import tpu as pltpu

EPS = 1e-5


def _vmem_capacity_bytes() -> int:
    """Physical VMEM per core, with a conservative (v7x-sized) fallback."""
    try:
        cap = int(getattr(pltpu.get_tpu_info(), "vmem_capacity_bytes", 0))
        if cap > 0:
            return cap
    except Exception:
        pass
    return 64 * 1024 * 1024


# ---------------------------------------------------------------------------
# Path 1: single-pass kernel (whole problem resident in VMEM).
# ---------------------------------------------------------------------------
def _single_pass(xs, w_mat, g, b, *, Cout, M, total, eps, out_dtype, vmem_limit):
    N, Cin, _ = xs.shape

    def kernel(x_ref, w_ref, g_ref, b_ref, o_ref, y_ref):
        # x_ref: [N, Cin, M]  w_ref: [Cout, Cin]  g_ref/b_ref: [Cout, 1]
        # o_ref: [N, Cout, M] y_ref: [N, Cout, M] f32 scratch
        w = w_ref[...]
        s = jnp.zeros((Cout, 1), jnp.float32)
        ssq = jnp.zeros((Cout, 1), jnp.float32)
        for n in range(N):                                # N is small & static here
            xn = jnp.maximum(x_ref[n], 0.0)               # ReLU (VPU)
            yn = jnp.dot(w, xn, preferred_element_type=jnp.float32)   # MXU, K=32
            y_ref[n] = yn
            s = s + jnp.sum(yn, axis=1, keepdims=True)
            ssq = ssq + jnp.sum(yn * yn, axis=1, keepdims=True)
        inv_cnt = 1.0 / float(total)
        mean = s * inv_cnt
        var = jnp.maximum(ssq * inv_cnt - mean * mean, 0.0)
        scale = g_ref[...] * jax.lax.rsqrt(var + eps)
        shift = b_ref[...] - mean * scale
        for n in range(N):
            o_ref[n] = (y_ref[n] * scale + shift).astype(o_ref.dtype)

    flops = 2 * total * Cin * Cout + 6 * total * Cout
    bytes_accessed = (xs.size * xs.dtype.itemsize + w_mat.size * 4
                      + g.size * 4 + b.size * 4
                      + N * Cout * M * jnp.dtype(out_dtype).itemsize)

    return pl.pallas_call(
        kernel,
        out_shape=jax.ShapeDtypeStruct((N, Cout, M), out_dtype),
        grid_spec=pltpu.PrefetchScalarGridSpec(
            num_scalar_prefetch=0,
            grid=(1,),
            in_specs=[
                pl.BlockSpec((N, Cin, M), lambda i: (0, 0, 0)),
                pl.BlockSpec((Cout, Cin), lambda i: (0, 0)),
                pl.BlockSpec((Cout, 1), lambda i: (0, 0)),
                pl.BlockSpec((Cout, 1), lambda i: (0, 0)),
            ],
            out_specs=pl.BlockSpec((N, Cout, M), lambda i: (0, 0, 0)),
            scratch_shapes=[pltpu.VMEM((N, Cout, M), jnp.float32)],
        ),
        compiler_params=pltpu.CompilerParams(
            dimension_semantics=("arbitrary",),
            vmem_limit_bytes=int(vmem_limit),
        ),
        cost_estimate=pl.CostEstimate(
            flops=int(flops), transcendentals=int(Cout),
            bytes_accessed=int(bytes_accessed)),
    )(xs, w_mat, g, b)


# ---------------------------------------------------------------------------
# Path 2: two-pass tiled fallback (stats pass + recompute/normalize pass).
# ---------------------------------------------------------------------------
def _two_pass_tiled(xs, w_mat, g, b, *, Cout, M, total, eps, out_dtype,
                    block_m, vmem_limit):
    N, Cin, _ = xs.shape

    if M <= block_m:
        tm = M                                   # full dim: no ragged tile, no mask
    else:
        tm = max(128, (block_m // 128) * 128)    # lane-dense 128-multiple
    nm = pl.cdiv(M, tm)
    ragged = (M % tm) != 0

    def kernel(x_ref, w_ref, g_ref, b_ref, o_ref, scale_ref, shift_ref):
        # x_ref: [Cin, tm]   w_ref: [Cout, Cin]   g_ref/b_ref: [Cout, 1]
        # o_ref: [Cout, tm]  scale_ref/shift_ref: [Cout, 1] f32 scratch (persistent)
        p = pl.program_id(0)          # 0 = stats pass, 1 = normalize/write pass
        n = pl.program_id(1)          # image index
        i = pl.program_id(2)          # M tile index

        @pl.when((p == 0) & (n == 0) & (i == 0))
        def _init():
            scale_ref[...] = jnp.zeros_like(scale_ref)   # holds sum during pass 0
            shift_ref[...] = jnp.zeros_like(shift_ref)   # holds sum of squares

        x = jnp.maximum(x_ref[...], 0.0)                 # ReLU (VPU)
        # 1x1 conv == matmul on the MXU; lane-dense [Cout, tm] result, f32 accumulate.
        y = jnp.dot(w_ref[...], x, preferred_element_type=jnp.float32)

        def _accumulate(yv):
            scale_ref[...] += jnp.sum(yv, axis=1, keepdims=True)
            shift_ref[...] += jnp.sum(yv * yv, axis=1, keepdims=True)

        if ragged:
            # Mask is materialized ONLY for the last (partial) tile of the stats pass;
            # pass 1 never needs it (out-of-range lanes are never written back).
            @pl.when((p == 0) & (i < nm - 1))
            def _acc_full():
                _accumulate(y)

            @pl.when((p == 0) & (i == nm - 1))
            def _acc_ragged():
                col = jax.lax.broadcasted_iota(jnp.int32, y.shape, 1)
                _accumulate(jnp.where(col < (M - i * tm), y, 0.0))
        else:
            @pl.when(p == 0)
            def _acc():
                _accumulate(y)

        # Last step of the stats pass: fold BN affine into fused scale/shift.
        @pl.when((p == 0) & (n == N - 1) & (i == nm - 1))
        def _finalize():
            inv_cnt = 1.0 / float(total)
            mean = scale_ref[...] * inv_cnt
            var = jnp.maximum(shift_ref[...] * inv_cnt - mean * mean, 0.0)
            sc = g_ref[...] * jax.lax.rsqrt(var + eps)
            scale_ref[...] = sc                          # scratch now holds: scale
            shift_ref[...] = b_ref[...] - mean * sc      # scratch now holds: shift

        @pl.when(p == 1)
        def _write():
            o_ref[...] = (y * scale_ref[...] + shift_ref[...]).astype(o_ref.dtype)

    flops = 2 * (2 * total * Cin * Cout) + 8 * total * Cout
    bytes_accessed = (2 * xs.size * xs.dtype.itemsize + w_mat.size * 4
                      + g.size * 4 + b.size * 4
                      + N * Cout * M * jnp.dtype(out_dtype).itemsize)

    return pl.pallas_call(
        kernel,
        out_shape=jax.ShapeDtypeStruct((N, Cout, M), out_dtype),
        grid_spec=pltpu.PrefetchScalarGridSpec(
            num_scalar_prefetch=0,
            grid=(2, N, nm),
            in_specs=[
                pl.BlockSpec((None, Cin, tm), lambda p, n, i: (n, 0, i)),
                pl.BlockSpec((Cout, Cin), lambda p, n, i: (0, 0)),   # VMEM-resident
                pl.BlockSpec((Cout, 1), lambda p, n, i: (0, 0)),
                pl.BlockSpec((Cout, 1), lambda p, n, i: (0, 0)),
            ],
            # During pass 0 every step maps to output block (0,0,0): the block stays
            # resident and is never written, so pass 0 costs zero output HBM traffic.
            # (Relies on Pallas only flushing an output block when its index changes;
            # the index sequence for block (0,0,0) is consecutive, so this is safe.)
            out_specs=pl.BlockSpec((None, Cout, tm),
                                   lambda p, n, i: (n * p, 0, i * p)),
            scratch_shapes=[
                pltpu.VMEM((Cout, 1), jnp.float32),
                pltpu.VMEM((Cout, 1), jnp.float32),
            ],
        ),
        # TODO(synk): megacore (v7x) variant — per-core partial sums + combine so the
        # (n, i) axes can run "parallel" across the 2 TensorCores.
        compiler_params=pltpu.CompilerParams(
            dimension_semantics=("arbitrary", "arbitrary", "arbitrary"),
            vmem_limit_bytes=int(vmem_limit),
        ),
        cost_estimate=pl.CostEstimate(
            flops=int(flops), transcendentals=int(Cout),
            bytes_accessed=int(bytes_accessed)),
    )(xs, w_mat, g, b)


# ---------------------------------------------------------------------------
# Wrapper: ReLU -> 1x1 stride-2 conv (no bias) -> BatchNorm2d (training, affine).
# ---------------------------------------------------------------------------
def relu_conv_bn(x_nchw, w_oihw, gamma, beta, *, block_m=2048, eps=EPS,
                 force_two_pass=False):
    N, Cin, H, W = x_nchw.shape
    Cout = w_oihw.shape[0]
    Ho, Wo = (H + 1) // 2, (W + 1) // 2          # VALID, kernel 1, stride 2
    M = Ho * Wo                                   # flattened output-spatial per image
    total = N * M                                 # BN population count per channel

    # The ONLY wrapper data-movement op: stride-2 decimation into a contiguous,
    # lane-dense [N, Cin, M] view (the reshape itself is free, and so is the final
    # [N, Cout, M] -> NCHW reshape below).
    # TODO(synk): fuse this slice into the Pallas input DMA via allow_input_fusion.
    xs = x_nchw[:, :, ::2, ::2].reshape(N, Cin, M)
    w_mat = w_oihw.reshape(Cout, Cin).astype(jnp.float32)     # OIHW -> [Cout, Cin]
    g = gamma.reshape(Cout, 1).astype(jnp.float32)
    b = beta.reshape(Cout, 1).astype(jnp.float32)

    # Path selection: single-pass if x + y(f32 scratch) + out comfortably fit VMEM.
    itemsize = jnp.dtype(x_nchw.dtype).itemsize
    resident_bytes = (2 * N * Cin * M * itemsize      # x block (double-buffer margin)
                      + 2 * N * Cout * M * itemsize   # out block (double-buffer margin)
                      + N * Cout * M * 4              # y f32 scratch
                      + (2 << 20))                    # headroom
    vmem_cap = _vmem_capacity_bytes()
    small_budget = min(vmem_cap * 3 // 4, 96 * 1024 * 1024)

    if (not force_two_pass) and resident_bytes <= small_budget:
        vmem_limit = min(resident_bytes + (16 << 20), vmem_cap - (4 << 20))
        vmem_limit = max(int(vmem_limit), 32 * 1024 * 1024)
        out_flat = _single_pass(xs, w_mat, g, b, Cout=Cout, M=M, total=total,
                                eps=eps, out_dtype=x_nchw.dtype,
                                vmem_limit=vmem_limit)
    else:
        out_flat = _two_pass_tiled(xs, w_mat, g, b, Cout=Cout, M=M, total=total,
                                   eps=eps, out_dtype=x_nchw.dtype,
                                   block_m=block_m, vmem_limit=32 * 1024 * 1024)

    # [N, Cout, Ho*Wo] -> NCHW, a free reshape (no transpose).
    return out_flat.reshape(N, Cout, Ho, Wo)


if __name__ == "__main__":
    key = jax.random.PRNGKey(0)
    k_x, k_w, k_g, k_b = jax.random.split(key, 4)

    # Shapes of the original module: x14 = torch.randn([1, 32, 56, 56]).
    N, Cin, H, W = 1, 32, 56, 56
    Cout = 64

    x = jax.random.normal(k_x, (N, Cin, H, W), dtype=jnp.float32)
    w = jax.random.normal(k_w, (Cout, Cin, 1, 1), dtype=jnp.float32) * 0.1
    gamma = 1.0 + 0.1 * jax.random.normal(k_g, (Cout,), dtype=jnp.float32)
    beta = 0.1 * jax.random.normal(k_b, (Cout,), dtype=jnp.float32)

    # Pure-JAX reference (ReLU -> strided 1x1 conv -> BN with batch stats).
    xr = jnp.maximum(x, 0.0)
    y_ref = jax.lax.conv_general_dilated(
        xr, w, window_strides=(2, 2), padding="VALID",
        dimension_numbers=("NCHW", "OIHW", "NCHW"))
    mu = jnp.mean(y_ref, axis=(0, 2, 3), keepdims=True)
    var = jnp.mean((y_ref - mu) ** 2, axis=(0, 2, 3), keepdims=True)
    ref = (y_ref - mu) * jax.lax.rsqrt(var + EPS) * gamma.reshape(1, -1, 1, 1) \
        + beta.reshape(1, -1, 1, 1)

    # Path 1: single-pass resident kernel (auto-selected at this size).
    out_small = jax.block_until_ready(jax.jit(relu_conv_bn)(x, w, gamma, beta))
    assert out_small.shape == ref.shape, (out_small.shape, ref.shape)
    err_small = float(jnp.max(jnp.abs(out_small - ref)))
    assert err_small < 2e-3, f"single-pass max abs error {err_small}"

    # Path 2: two-pass tiled fallback, forced with a small tile so the multi-tile and
    # ragged-last-tile masking paths are also compiled and checked.
    tiled_fn = jax.jit(functools.partial(relu_conv_bn, force_two_pass=True,
                                         block_m=256))
    out_tiled = jax.block_until_ready(tiled_fn(x, w, gamma, beta))
    assert out_tiled.shape == ref.shape, (out_tiled.shape, ref.shape)
    err_tiled = float(jnp.max(jnp.abs(out_tiled - ref)))
    assert err_tiled < 2e-3, f"two-pass max abs error {err_tiled}"

    print("KERNEL_OK")
</pallas_src>

<mosaic_0001>
module attributes {stable_mosaic.version = 11 : i64} {
  func.func @kernel(%arg0: i32, %arg1: memref<1x32x784xf32, #tpu.memory_space<vmem>>, %arg2: memref<64x32xf32, #tpu.memory_space<vmem>>, %arg3: memref<64x1xf32, #tpu.memory_space<vmem>>, %arg4: memref<64x1xf32, #tpu.memory_space<vmem>>, %arg5: memref<1x64x784xf32, #tpu.memory_space<vmem>>, %arg6: memref<1x64x784xf32, #tpu.memory_space<vmem>>) attributes {dimension_semantics = [#tpu.dimension_semantics<arbitrary>], iteration_bounds = array<i64: 1>, scalar_prefetch = 0 : i64, scratch_operands = 1 : i64, tpu.core_type = #tpu.core_type<tc>, window_params = [{pipeline_mode = #tpu.pipeline_mode<synchronous>, transform_indices = @transform_0, window_bounds = array<i64: 1, 32, 784>}, {pipeline_mode = #tpu.pipeline_mode<synchronous>, transform_indices = @transform_1, window_bounds = array<i64: 64, 32>}, {pipeline_mode = #tpu.pipeline_mode<synchronous>, transform_indices = @transform_2, window_bounds = array<i64: 64, 1>}, {pipeline_mode = #tpu.pipeline_mode<synchronous>, transform_indices = @transform_3, window_bounds = array<i64: 64, 1>}, {pipeline_mode = #tpu.pipeline_mode<synchronous>, transform_indices = @transform_4, window_bounds = array<i64: 1, 64, 784>}]} {
    %c0 = arith.constant 0 : index
    %c0_0 = arith.constant 0 : index
    %0 = vector.load %arg2[%c0, %c0_0] : memref<64x32xf32, #tpu.memory_space<vmem>>, vector<64x32xf32>
    %cst = arith.constant 0.000000e+00 : f32
    %1 = vector.broadcast %cst : f32 to vector<64x1xf32>
    %cst_1 = arith.constant 0.000000e+00 : f32
    %2 = vector.broadcast %cst_1 : f32 to vector<64x1xf32>
    %c0_2 = arith.constant 0 : index
    %c0_3 = arith.constant 0 : index
    %c0_4 = arith.constant 0 : index
    %3 = vector.load %arg1[%c0_2, %c0_3, %c0_4] : memref<1x32x784xf32, #tpu.memory_space<vmem>>, vector<1x32x784xf32>
    %4 = vector.shape_cast %3 : vector<1x32x784xf32> to vector<32x784xf32>
    %cst_5 = arith.constant 0.000000e+00 : f32
    %5 = vector.broadcast %cst_5 : f32 to vector<32x784xf32>
    %6 = arith.maximumf %4, %5 : vector<32x784xf32>
    %cst_6 = arith.constant dense<0.000000e+00> : vector<64x784xf32>
    %7 = tpu.matmul %0, %6, %cst_6 {dimension_numbers = #tpu.dot_dimension_numbers<[1], [0], [0], [1], [0, 0, 1, 1], [], []>} : vector<64x32xf32>, vector<32x784xf32>, vector<64x784xf32> -> vector<64x784xf32>
    %c0_7 = arith.constant 0 : index
    %c0_8 = arith.constant 0 : index
    %c0_9 = arith.constant 0 : index
    %8 = vector.load %arg6[%c0_7, %c0_8, %c0_9] : memref<1x64x784xf32, #tpu.memory_space<vmem>>, vector<1x64x784xf32>
    %9 = vector.shape_cast %8 : vector<1x64x784xf32> to vector<64x784xf32>
    %10 = vector.shape_cast %7 : vector<64x784xf32> to vector<1x64x784xf32>
    tpu.vector_store %arg6[%c0_7, %c0_8, %c0_9], %10 {strides = array<i32>} : memref<1x64x784xf32, #tpu.memory_space<vmem>>, vector<1x64x784xf32>,
    %cst_10 = arith.constant dense<0.000000e+00> : vector<64xf32>
    %11 = vector.multi_reduction <add>, %7, %cst_10 [1] : vector<64x784xf32> to vector<64xf32>
    %12 = vector.shape_cast %11 : vector<64xf32> to vector<64x1xf32>
    %13 = arith.addf %1, %12 : vector<64x1xf32>
    %14 = arith.mulf %7, %7 : vector<64x784xf32>
    %cst_11 = arith.constant dense<0.000000e+00> : vector<64xf32>
    %15 = vector.multi_reduction <add>, %14, %cst_11 [1] : vector<64x784xf32> to vector<64xf32>
    %16 = vector.shape_cast %15 : vector<64xf32> to vector<64x1xf32>
    %17 = arith.addf %2, %16 : vector<64x1xf32>
    %cst_12 = arith.constant 0.00127551018 : f32
    %18 = vector.broadcast %cst_12 : f32 to vector<64x1xf32>
    %19 = arith.mulf %13, %18 : vector<64x1xf32>
    %cst_13 = arith.constant 0.00127551018 : f32
    %20 = vector.broadcast %cst_13 : f32 to vector<64x1xf32>
    %21 = arith.mulf %17, %20 : vector<64x1xf32>
    %22 = arith.mulf %19, %19 : vector<64x1xf32>
    %23 = arith.subf %21, %22 : vector<64x1xf32>
    %cst_14 = arith.constant 0.000000e+00 : f32
    %24 = vector.broadcast %cst_14 : f32 to vector<64x1xf32>
    %25 = arith.maximumf %23, %24 : vector<64x1xf32>
    %c0_15 = arith.constant 0 : index
    %c0_16 = arith.constant 0 : index
    %26 = vector.load %arg3[%c0_15, %c0_16] : memref<64x1xf32, #tpu.memory_space<vmem>>, vector<64x1xf32>
    %cst_17 = arith.constant 9.99999974E-6 : f32
    %27 = vector.broadcast %cst_17 : f32 to vector<64x1xf32>
    %28 = arith.addf %25, %27 : vector<64x1xf32>
    %29 = math.rsqrt %28 : vector<64x1xf32>
    %30 = arith.mulf %26, %29 : vector<64x1xf32>
    %c0_18 = arith.constant 0 : index
    %c0_19 = arith.constant 0 : index
    %31 = vector.load %arg4[%c0_18, %c0_19] : memref<64x1xf32, #tpu.memory_space<vmem>>, vector<64x1xf32>
    %32 = arith.mulf %19, %30 : vector<64x1xf32>
    %33 = arith.subf %31, %32 : vector<64x1xf32>
    %c0_20 = arith.constant 0 : index
    %c0_21 = arith.constant 0 : index
    %c0_22 = arith.constant 0 : index
    %34 = vector.load %arg6[%c0_20, %c0_21, %c0_22] : memref<1x64x784xf32, #tpu.memory_space<vmem>>, vector<1x64x784xf32>
    %35 = vector.shape_cast %34 : vector<1x64x784xf32> to vector<64x784xf32>
    %36 = vector.broadcast %30 : vector<64x1xf32> to vector<64x784xf32>
    %37 = arith.mulf %35, %36 : vector<64x784xf32>
    %38 = vector.broadcast %33 : vector<64x1xf32> to vector<64x784xf32>
    %39 = arith.addf %37, %38 : vector<64x784xf32>
    %c0_23 = arith.constant 0 : index
    %c0_24 = arith.constant 0 : index
    %c0_25 = arith.constant 0 : index
    %40 = vector.load %arg5[%c0_23, %c0_24, %c0_25] : memref<1x64x784xf32, #tpu.memory_space<vmem>>, vector<1x64x784xf32>
    %41 = vector.shape_cast %40 : vector<1x64x784xf32> to vector<64x784xf32>
    %42 = vector.shape_cast %39 : vector<64x784xf32> to vector<1x64x784xf32>
    tpu.vector_store %arg5[%c0_23, %c0_24, %c0_25], %42 {strides = array<i32>} : memref<1x64x784xf32, #tpu.memory_space<vmem>>, vector<1x64x784xf32>,
    return
  }
  func.func @transform_0(%arg0: i32) -> (i32, i32, i32) {
    %c0_i32 = arith.constant 0 : i32
    %c0_i32_0 = arith.constant 0 : i32
    %c0_i32_1 = arith.constant 0 : i32
    %c0_i32_2 = arith.constant 0 : i32
    return %c0_i32, %c0_i32_0, %c0_i32_1 : i32, i32, i32
  }
  func.func @transform_1(%arg0: i32) -> (i32, i32) {
    %c0_i32 = arith.constant 0 : i32
    %c0_i32_0 = arith.constant 0 : i32
    %c0_i32_1 = arith.constant 0 : i32
    return %c0_i32, %c0_i32_0 : i32, i32
  }
  func.func @transform_2(%arg0: i32) -> (i32, i32) {
    %c0_i32 = arith.constant 0 : i32
    %c0_i32_0 = arith.constant 0 : i32
    %c0_i32_1 = arith.constant 0 : i32
    return %c0_i32, %c0_i32_0 : i32, i32
  }
  func.func @transform_3(%arg0: i32) -> (i32, i32) {
    %c0_i32 = arith.constant 0 : i32
    %c0_i32_0 = arith.constant 0 : i32
    %c0_i32_1 = arith.constant 0 : i32
    return %c0_i32, %c0_i32_0 : i32, i32
  }
  func.func @transform_4(%arg0: i32) -> (i32, i32, i32) {
    %c0_i32 = arith.constant 0 : i32
    %c0_i32_0 = arith.constant 0 : i32
    %c0_i32_1 = arith.constant 0 : i32
    %c0_i32_2 = arith.constant 0 : i32
    return %c0_i32, %c0_i32_0, %c0_i32_1 : i32, i32, i32
  }
}

</mosaic_0001>

<bundles_post_ra>
// kernel: relu_conv_bn.1
= control target key start
LH: loop header
LB: loop body
LE: loop exit
PB: predicated region body
PF: predicated region fallthrough
CT: control target
= control target key end

     0   :  { %v1347_v3 = vmov 0.0   ;;  %vm81_vm0 = vcmask 261120   ;;  %vm556_vm1 = vcmask 130048   ;;  %s2146_s0 = inlined_call_operand.vmem [shape: f32[1,32,784], index: 0, kind: input, shape index: {}]   ;;  %s2147_s1 = inlined_call_operand.vmem [shape: f32[64,32], index: 1, kind: input, shape index: {}]   ;;  %s2148_s2 = inlined_call_operand.vmem [shape: f32[64,1], index: 2, kind: input, shape index: {}]   ;;  %s2149_s3 = inlined_call_operand.vmem [shape: f32[64,1], index: 3, kind: input, shape index: {}]   ;;  %s2150_s4 = inlined_call_operand.vmem [shape: f32[1,64,784], index: 4, kind: output, shape index: {}]  }
   0x1   :  { %v26_v0 = vld [vmem:[%s2146_s0 + $0x8] sm:$0xff]  ;;  %v33_v1 = vld [vmem:[%s2146_s0 + $0x40] sm:$0xff]  ;;  %170 = vmatprep.mubr.f32.mxu0 %v1347_v3  ;;  %206 = vmatprep.mubr.f32.mxu1 %v1347_v3  ;;  %v32_v6 = vld [vmem:[%s2146_s0 + $0x38] sm:$0xff] }
   0x2   :  { %v25_v2 = vld [vmem:[%s2146_s0] sm:$0xff]  ;;  %v54_v4 = vmax.f32 %v26_v0, 0.0  ;;  %v61_v5 = vmax.f32 %v33_v1, 0.0  ;;  %v40_v8 = vld [vmem:[%s2146_s0 + $0x78] sm:$0xff]  ;;  %v47_v9 = vld [vmem:[%s2146_s0 + $0xb0] sm:$0xff]  ;;  %v60_v10 = vmax.f32 %v32_v6, 0.0 }
   0x3   :  { %v53_v7 = vmax.f32 %v25_v2, 0.0  ;;  %v68_v11 = vmax.f32 %v40_v8, 0.0  ;;  %v75_v12 = vmax.f32 %v47_v9, 0.0  ;;  %v39_v13 = vld [vmem:[%s2146_s0 + $0x70] sm:$0xff]  ;;  %v46_v14 = vld [vmem:[%s2146_s0 + $0xa8] sm:$0xff]  ;;  %v28_v18 = vld [vmem:[%s2146_s0 + $0x18] sm:$0xff] }
   0x4   :  { %v1291_v15 = vpack.c.bf16 %v61_v5, %v54_v4  ;;  %v67_v16 = vmax.f32 %v39_v13, 0.0  ;;  %v74_v17 = vmax.f32 %v46_v14, 0.0  ;;  %v35_v19 = vld [vmem:[%s2146_s0 + $0x50] sm:$0xff]  ;;  %v56_v22 = vmax.f32 %v28_v18, 0.0  ;;  %v34_v25 = vld [vmem:[%s2146_s0 + $0x48] sm:$0xff]  ;;  %v49_v27 = vld [vmem:[%s2146_s0 + $0xc0] sm:$0xff] }
   0x5   :  { %v1293_v20 = vpack.c.bf16 %v60_v10, %v53_v7  ;;  %v1295_v21 = vpack.c.bf16 %v75_v12, %v68_v11  ;;  %v63_v23 = vmax.f32 %v35_v19, 0.0  ;;  %v27_v24 = vld [vmem:[%s2146_s0 + $0x10] sm:$0xff]  ;;  %v42_v26 = vld [vmem:[%s2146_s0 + $0x88] sm:$0xff]  ;;  %v62_v30 = vmax.f32 %v34_v25, 0.0  ;;  %v41_v31 = vld [vmem:[%s2146_s0 + $0x80] sm:$0xff] }
   0x6   :  { %1292 = vmatprep.subr.bf16.mxu0 %v1291_v15  ;;  %1323 = vmatprep.subr.bf16.mxu1 %v1291_v15  ;;  %v1297_v28 = vpack.c.bf16 %v74_v17, %v67_v16  ;;  %v55_v29 = vmax.f32 %v27_v24, 0.0  ;;  %v30_v32 = vld [vmem:[%s2146_s0 + $0x28] sm:$0xff]  ;;  %v70_v34 = vmax.f32 %v42_v26, 0.0  ;;  %v77_v35 = vmax.f32 %v49_v27, 0.0  ;;  %v48_v36 = vld [vmem:[%s2146_s0 + $0xb8] sm:$0xff]  ;;  %v37_v37 = vld [vmem:[%s2146_s0 + $0x60] sm:$0xff] }
   0x7   :  { %1294 = vmatpush1.bf16.msra.mxu0 %v1293_v20  ;;  %1325 = vmatpush1.bf16.msra.mxu1 %v1293_v20  ;;  %v1299_v33 = vpack.c.bf16 %v63_v23, %v56_v22  ;;  %v58_v38 = vmax.f32 %v30_v32, 0.0  ;;  %v29_v39 = vld [vmem:[%s2146_s0 + $0x20] sm:$0xff]  ;;  %v65_v40 = vmax.f32 %v37_v37, 0.0  ;;  %v36_v41 = vld [vmem:[%s2146_s0 + $0x58] sm:$0xff]  ;;  %v31_v43 = vld [vmem:[%s2146_s0 + $0x30] sm:$0xff]  ;;  %v69_v50 = vmax.f32 %v41_v31, 0.0 }
   0x8   :  { %1296 = vmatprep.subr.bf16.mxu0 %v1295_v21  ;;  %1324 = vmatprep.subr.bf16.mxu1 %v1295_v21  ;;  %v57_v42 = vmax.f32 %v29_v39, 0.0  ;;  %v38_v44 = vld [vmem:[%s2146_s0 + $0x68] sm:$0xff]  ;;  %v64_v45 = vmax.f32 %v36_v41, 0.0  ;;  %v44_v46 = vld [vmem:[%s2146_s0 + $0x98] sm:$0xff]  ;;  %v1448_v47 = vld [vmem:[%s2147_s1] sm:$0xff]  ;;  %v1301_v49 = vpack.c.bf16 %v62_v30, %v55_v29  ;;  %v76_v51 = vmax.f32 %v48_v36, 0.0 }
   0x9   :  { %v1453_v48 = vld [vmem:[%s2147_s1 + $0x30] sm:$0xff]  ;;  %v1307_v52 = vpack.c.bf16 %v65_v40, %v58_v38  ;;  %v1303_v54 = vpack.c.bf16 %v77_v35, %v70_v34  ;;  %v59_v55 = vmax.f32 %v31_v43, 0.0  ;;  %v66_v56 = vmax.f32 %v38_v44, 0.0  ;;  %v50_v61 = vld [vmem:[%s2146_s0 + $0xc8] sm:$0xff]  ;;  %v45_v62 = vld [vmem:[%s2146_s0 + $0xa0] sm:$0xff] }
   0xa   :  { %v51_v53 = vld [vmem:[%s2146_s0 + $0xd0] sm:$0xff]  ;;  %v1309_v57 = vpack.c.bf16 %v64_v45, %v57_v42  ;;  %v72_v58 = vmax.f32 %v44_v46, 0.0  ;;  %v52_v63 = vld [vmem:[%s2146_s0 + $0xd8] sm:$0xff]  ;;  %v18_v0 = vld [vmem:[%s2147_s1 + $0x8] sm:$0xff]  ;;  %v1305_v2 = vpack.c.bf16 %v76_v51, %v69_v50  ;;  %v78_v6 = vmax.f32 %v50_v61, 0.0 }
   0xb   :  { %1298 = vmatpush1.bf16.msra.mxu0 %v1297_v28  ;;  %1326 = vmatpush1.bf16.msra.mxu1 %v1297_v28  ;;  %v79_v59 = vmax.f32 %v51_v53, 0.0  ;;  %v43_v60 = vld [vmem:[%s2146_s0 + $0x90] sm:$0xff]  ;;  %v1481_v1 = vld [vmem:[%s2147_s1 + $0x38] sm:$0xff]  ;;  %v1315_v4 = vpack.c.bf16 %v66_v56, %v59_v55  ;;  %v73_v8 = vmax.f32 %v45_v62, 0.0  ;;  %v80_v9 = vmax.f32 %v52_v63, 0.0  ;;  %v21_v14 = vld [vmem:[%s2147_s1 + $0x20] sm:$0xff] }
   0xc   :  { %1300 = vmatprep.subr.bf16.mxu1 %v1299_v33  ;;  %1308 = vmatprep.subr.bf16.mxu0 %v1307_v52  ;;  %v71_v5 = vmax.f32 %v43_v60, 0.0  ;;  %v19_v10 = vld [vmem:[%s2147_s1 + $0x10] sm:$0xff]  ;;  %v20_v13 = vld [vmem:[%s2147_s1 + $0x18] sm:$0xff]  ;;  %v22_v15 = vld [vmem:[%s2147_s1 + $0x28] sm:$0xff] }
   0xd   :  { %v1311_v7 = vpack.c.bf16 %v79_v59, %v72_v58  ;;  %v1319_v12 = vpack.c.bf16 %v80_v9, %v73_v8 }
   0xe   :  { %1227 = vmatmul.mubr.msk.f32.vlgmr.msra.gmra.mrb[0].mxu0 %vm81_vm0, %v1448_v47  ;;  %1233 = vmatmul.mubr.msk.f32.vlgmr.msra.gmra.mrb[0].mxu1 %vm81_vm0, %v1453_v48  ;;  %v1313_v11 = vpack.c.bf16 %v78_v6, %v71_v5 }
   0xf   :  { %1302 = vmatpush1.bf16.msra.mxu1 %v1301_v49  ;;  %176 = vmatprep.mubr.f32.mxu0 %v1347_v3 }
  0x10   :  { %212 = vmatprep.mubr.f32.mxu1 %v1347_v3  ;;  %1304 = vmatprep.subr.bf16.mxu1 %v1303_v54 }
  0x11   :  { %1310 = vmatpush1.bf16.msra.mxu0 %v1309_v57 }
  0x12   :  { %1228 = vmatmul.mubr.msk.f32.gmra.mrb[2].mxu0 %vm81_vm0, %v18_v0  ;;  %1234 = vmatmul.mubr.msk.f32.gmra.mrb[2].mxu1 %vm81_vm0, %v1481_v1 }
  0x13   :  { %1306 = vmatpush1.bf16.msra.mxu1 %v1305_v2  ;;  %182 = vmatprep.mubr.f32.mxu0 %v1347_v3 }
  0x14   :  { %283 = vmatprep.mubr.f32.mxu1 %v1347_v3  ;;  %1316 = vmatprep.subr.bf16.mxu1 %v1315_v4 }
  0x15   :  { %1312 = vmatprep.subr.bf16.mxu0 %v1311_v7 }
  0x16   :  { %1229 = vmatmul.mubr.msk.f32.gmra.mrb[4].mxu0 %vm81_vm0, %v19_v10  ;;  %1235 = vmatmul.mubr.msk.f32.vlgmr.msra.gmra.mrb[4].mxu1 %vm81_vm0, %v1448_v47 }
  0x17   :  { %1318 = vmatpush3.bf16.msra.mxu1 %v1315_v4  ;;  %188 = vmatprep.mubr.f32.mxu0 %v1347_v3 }
  0x18   :  { %289 = vmatprep.mubr.f32.mxu1 %v1347_v3  ;;  %1314 = vmatpush1.bf16.msra.mxu0 %v1313_v11 }
  0x19   :  { %1320 = vmatprep.subr.bf16.mxu1 %v1319_v12 }
  0x1a   :  { %1230 = vmatmul.mubr.msk.f32.gmra.mrb[6].mxu0 %vm81_vm0, %v20_v13  ;;  %1236 = vmatmul.mubr.msk.f32.gmra.mrb[6].mxu1 %vm81_vm0, %v18_v0 }
  0x1b   :  { %194 = vmatprep.mubr.f32.mxu0 %v1347_v3  ;;  %295 = vmatprep.mubr.f32.mxu1 %v1347_v3 }
  0x1c   :  { %1322 = vmatpush3.bf16.msra.mxu1 %v1319_v12 }
  0x1e   :  { %1231 = vmatmul.mubr.msk.f32.gmra.mrb[8].mxu0 %vm81_vm0, %v21_v14  ;;  %1237 = vmatmul.mubr.msk.f32.gmra.mrb[8].mxu1 %vm81_vm0, %v19_v10 }
  0x1f   :  { %200 = vmatprep.mubr.f32.mxu0 %v1347_v3  ;;  %301 = vmatprep.mubr.f32.mxu1 %v1347_v3 }
  0x22   :  { %1232 = vmatmul.mubr.msk.f32.gmra.mrb[10].mxu0 %vm81_vm0, %v22_v15  ;;  %1238 = vmatmul.mubr.msk.f32.gmra.mrb[10].mxu1 %vm81_vm0, %v20_v13 }
  0x23   :  { %307 = vmatprep.mubr.f32.mxu1 %v1347_v3  ;;  %396 = vmatprep.mubr.f32.mxu0 %v1347_v3 }
  0x26   :  { %1239 = vmatmul.mubr.msk.f32.gmra.mrb[12].mxu1 %vm81_vm0, %v21_v14  ;;  %1243 = vmatmul.mubr.msk.f32.vlgmr.msra.gmra.mrb[12].mxu0 %vm81_vm0, %v1448_v47 }
  0x27   :  { %313 = vmatprep.mubr.f32.mxu1 %v1347_v3  ;;  %402 = vmatprep.mubr.f32.mxu0 %v1347_v3 }
  0x2a   :  { %1240 = vmatmul.mubr.msk.f32.gmra.mrb[14].mxu1 %vm81_vm0, %v22_v15  ;;  %1244 = vmatmul.mubr.msk.f32.gmra.mrb[14].mxu0 %vm81_vm0, %v18_v0 }
  0x2b   :  { %319 = vmatprep.mubr.f32.mxu1 %v1347_v3  ;;  %408 = vmatprep.mubr.f32.mxu0 %v1347_v3 }
  0x2e   :  { %1241 = vmatmul.mubr.msk.f32.gmra.mrb[16].mxu1 %vm81_vm0, %v1453_v48  ;;  %1245 = vmatmul.mubr.msk.f32.gmra.mrb[16].mxu0 %vm81_vm0, %v19_v10 }
  0x2f   :  { %325 = vmatprep.mubr.f32.mxu1 %v1347_v3  ;;  %414 = vmatprep.mubr.f32.mxu0 %v1347_v3 }
  0x32   :  { %1242 = vmatmul.mubr.msk.f32.gmra.mrb[18].mxu1 %vm81_vm0, %v1481_v1  ;;  %1246 = vmatmul.mubr.msk.f32.gmra.mrb[18].mxu0 %vm81_vm0, %v20_v13 }
  0x33   :  { %420 = vmatprep.mubr.f32.mxu0 %v1347_v3  ;;  %1279 = vmatprep.mubr.msk.f32.mxu1 %vm81_vm0, %v1448_v47 }
  0x36   :  { %1247 = vmatmul.mubr.msk.f32.gmra.mrb[20].mxu0 %vm81_vm0, %v21_v14  ;;  %1280 = vmatmul.mubr.msk.f32.vlgmr.msra.gmra.mrb[20].mxu1 %vm81_vm0, %v18_v0 }
  0x37   :  { %426 = vmatprep.mubr.f32.mxu0 %v1347_v3  ;;  %1282 = vmatprep.mubr.msk.f32.mxu1 %vm81_vm0, %v19_v10 }
  0x3a   :  { %1248 = vmatmul.mubr.msk.f32.gmra.mrb[22].mxu0 %vm81_vm0, %v22_v15  ;;  %1283 = vmatmul.mubr.msk.f32.gmra.mrb[22].mxu1 %vm81_vm0, %v20_v13 }
  0x3b   :  { %432 = vmatprep.mubr.f32.mxu0 %v1347_v3  ;;  %1285 = vmatprep.mubr.msk.f32.mxu1 %vm81_vm0, %v21_v14 }
  0x3e   :  { %1249 = vmatmul.mubr.msk.f32.gmra.mrb[24].mxu0 %vm81_vm0, %v1453_v48  ;;  %1286 = vmatmul.mubr.msk.f32.gmra.mrb[24].mxu1 %vm81_vm0, %v22_v15 }
  0x3f   :  { %438 = vmatprep.mubr.f32.mxu0 %v1347_v3  ;;  %1288 = vmatprep.mubr.msk.f32.mxu1 %vm81_vm0, %v1453_v48 }
  0x42   :  { %1250 = vmatmul.mubr.msk.f32.gmra.mrb[26].mxu0 %vm81_vm0, %v1481_v1  ;;  %1289 = vmatmul.mubr.msk.f32.gmra.mrb[26].mxu1 %vm81_vm0, %v1481_v1 }
  0xe1   :  { %v208_v16 = vpop.f32.mrb[0].mxu1  ;;  %v1556_v17 = vpop.f32.mrb[0].mxu0 }
  0xe2   :  { %593 = vst [vmem:[#allocation2 + $0x150] sm:$0xff] %v208_v16  ;;  %v729_v18 = vmul.f32 %v208_v16, %v208_v16  ;;  %v210_v19 = vpop.f32.mrb[1].mxu1  ;;  %v687_v20 = vmul.f32 %v1556_v17, %v1556_v17  ;;  %v1560_v21 = vpop.f32.mrb[1].mxu0 }
  0xe3   :  { %594 = vst [vmem:[#allocation2 + $0x158] sm:$0xff] %v210_v19  ;;  %v1562_v3 = vadd.f32 %v210_v19, %v208_v16  ;;  %v730_v22 = vmul.f32 %v210_v19, %v210_v19  ;;  %v607_v23 = vadd.f32 %v1560_v21, %v1556_v17  ;;  %v688_v24 = vmul.f32 %v1560_v21, %v1560_v21 }
  0xe5   :  { %v1568_v25 = vadd.f32 %v730_v22, %v729_v18  ;;  %v214_v26 = vpop.f32.mrb[2].mxu1  ;;  %v743_v27 = vadd.f32 %v688_v24, %v687_v20  ;;  %v1570_v28 = vpop.f32.mrb[2].mxu0 }
  0xe6   :  { %600 = vst [vmem:[#allocation2 + $0x188] sm:$0xff] %v214_v26  ;;  %v736_v29 = vmul.f32 %v214_v26, %v214_v26  ;;  %v216_v30 = vpop.f32.mrb[3].mxu1  ;;  %v694_v31 = vmul.f32 %v1570_v28, %v1570_v28  ;;  %v1574_v32 = vpop.f32.mrb[3].mxu0 }
  0xe7   :  { %601 = vst [vmem:[#allocation2 + $0x190] sm:$0xff] %v216_v30  ;;  %v1576_v33 = vadd.f32 %v216_v30, %v214_v26  ;;  %v737_v34 = vmul.f32 %v216_v30, %v216_v30  ;;  %v616_v35 = vadd.f32 %v1574_v32, %v1570_v28  ;;  %v695_v36 = vmul.f32 %v1574_v32, %v1574_v32 }
  0xe9   :  { %v1582_v37 = vadd.f32 %v737_v34, %v736_v29  ;;  %v1584_v38 = vpop.f32.mrb[4].mxu1  ;;  %v752_v39 = vadd.f32 %v695_v36, %v694_v31  ;;  %v1586_v40 = vpop.f32.mrb[4].mxu0 }
  0xea   :  { %v608_v41 = vadd.f32 %v607_v23, %v1584_v38  ;;  %v689_v42 = vmul.f32 %v1584_v38, %v1584_v38  ;;  %v1591_v43 = vpop.f32.mrb[5].mxu1  ;;  %v701_v44 = vmul.f32 %v1586_v40, %v1586_v40  ;;  %v1595_v45 = vpop.f32.mrb[5].mxu0 }
  0xeb   :  { %v690_v46 = vmul.f32 %v1591_v43, %v1591_v43  ;;  %v625_v47 = vadd.f32 %v1595_v45, %v1586_v40  ;;  %v702_v48 = vmul.f32 %v1595_v45, %v1595_v45 }
  0xec   :  { %v744_v49 = vadd.f32 %v743_v27, %v689_v42  ;;  %v609_v50 = vadd.f32 %v608_v41, %v1591_v43 }
  0xed   :  { %v1604_v51 = vpop.f32.mrb[6].mxu1  ;;  %v761_v52 = vadd.f32 %v702_v48, %v701_v44  ;;  %v1606_v53 = vpop.f32.mrb[6].mxu0 }
  0xee   :  { %v745_v54 = vadd.f32 %v744_v49, %v690_v46  ;;  %v617_v55 = vadd.f32 %v616_v35, %v1604_v51  ;;  %v696_v56 = vmul.f32 %v1604_v51, %v1604_v51  ;;  %v1611_v57 = vpop.f32.mrb[7].mxu1  ;;  %v708_v58 = vmul.f32 %v1606_v53, %v1606_v53  ;;  %v1615_v59 = vpop.f32.mrb[7].mxu0 }
  0xef   :  { %v697_v60 = vmul.f32 %v1611_v57, %v1611_v57  ;;  %v634_v61 = vadd.f32 %v1615_v59, %v1606_v53  ;;  %v709_v62 = vmul.f32 %v1615_v59, %v1615_v59 }
  0xf0   :  { %v753_v63 = vadd.f32 %v752_v39, %v696_v56  ;;  %v618_v0 = vadd.f32 %v617_v55, %v1611_v57 }
  0xf1   :  { %v1624_v1 = vpop.f32.mrb[8].mxu1  ;;  %v770_v2 = vadd.f32 %v709_v62, %v708_v58  ;;  %v1626_v4 = vpop.f32.mrb[8].mxu0 }
  0xf2   :  { %2163 = vst [vmem:[#allocation3_spill] sm:$0xff] %v1626_v4  ;;  %v754_v5 = vadd.f32 %v753_v63, %v697_v60  ;;  %v626_v6 = vadd.f32 %v625_v47, %v1624_v1  ;;  %v703_v7 = vmul.f32 %v1624_v1, %v1624_v1  ;;  %v1631_v8 = vpop.f32.mrb[9].mxu1  ;;  %v715_v9 = vmul.f32 %v1626_v4, %v1626_v4  ;;  %v1635_v10 = vpop.f32.mrb[9].mxu0 }
  0xf3   :  { %2164 = vst [vmem:[#allocation4_spill] sm:$0xff] %v1635_v10  ;;  %v704_v11 = vmul.f32 %v1631_v8, %v1631_v8  ;;  %v643_v12 = vadd.f32 %v1635_v10, %v1626_v4  ;;  %v716_v13 = vmul.f32 %v1635_v10, %v1635_v10 }
  0xf4   :  { %v762_v14 = vadd.f32 %v761_v52, %v703_v7  ;;  %v627_v15 = vadd.f32 %v626_v6, %v1631_v8 }
  0xf5   :  { %v1644_v16 = vpop.f32.mrb[10].mxu1  ;;  %v779_v18 = vadd.f32 %v716_v13, %v715_v9  ;;  %v1646_v19 = vpop.f32.mrb[10].mxu0 }
  0xf6   :  { %v763_v20 = vadd.f32 %v762_v14, %v704_v11  ;;  %v635_v22 = vadd.f32 %v634_v61, %v1644_v16  ;;  %v710_v23 = vmul.f32 %v1644_v16, %v1644_v16  ;;  %v1651_v24 = vpop.f32.mrb[11].mxu1  ;;  %v722_v26 = vmul.f32 %v1646_v19, %v1646_v19  ;;  %v1655_v27 = vpop.f32.mrb[11].mxu0 }
  0xf7   :  { %v711_v29 = vmul.f32 %v1651_v24, %v1651_v24  ;;  %v652_v30 = vadd.f32 %v1655_v27, %v1646_v19  ;;  %v723_v31 = vmul.f32 %v1655_v27, %v1655_v27 }
  0xf8   :  { %v771_v34 = vadd.f32 %v770_v2, %v710_v23  ;;  %v636_v35 = vadd.f32 %v635_v22, %v1651_v24 }
  0xf9   :  { %v788_v36 = vadd.f32 %v723_v31, %v722_v26  ;;  %v1664_v39 = vpop.f32.mrb[12].mxu1  ;;  %v1666_v41 = vpop.f32.mrb[12].mxu0 }
  0xfa   :  { %2165 = vst [vmem:[#allocation5_spill] sm:$0xff] %v1664_v39  ;;  %v1668_v42 = vadd.f32 %v771_v34, %v711_v29  ;;  %v644_v44 = vadd.f32 %v643_v12, %v1664_v39  ;;  %v717_v46 = vmul.f32 %v1664_v39, %v1664_v39  ;;  %v610_v47 = vadd.f32 %v609_v50, %v1666_v41  ;;  %v1674_v48 = vpop.f32.mrb[13].mxu1  ;;  %v1676_v49 = vpop.f32.mrb[13].mxu0 }
  0xfb   :  { %2166 = vst [vmem:[#allocation6_spill] sm:$0xff] %v1674_v48  ;;  %v691_v52 = vmul.f32 %v1666_v41, %v1666_v41  ;;  %v718_v55 = vmul.f32 %v1674_v48, %v1674_v48  ;;  %v692_v56 = vmul.f32 %v1676_v49, %v1676_v49 }
  0xfc   :  { %v780_v58 = vadd.f32 %v779_v18, %v717_v46  ;;  %v645_v60 = vadd.f32 %v644_v44, %v1674_v48  ;;  %v1686_v61 = vadd.f32 %v610_v47, %v1676_v49 }
  0xfd   :  { %v1688_v50 = vpop.f32.mrb[14].mxu1  ;;  %v1690_v62 = vpop.f32.mrb[14].mxu0  ;;  %v746_v63 = vadd.f32 %v745_v54, %v691_v52 }
  0xfe   :  { %v1692_v2 = vadd.f32 %v780_v58, %v718_v55  ;;  %v653_v6 = vadd.f32 %v652_v30, %v1688_v50  ;;  %v724_v7 = vmul.f32 %v1688_v50, %v1688_v50  ;;  %v619_v9 = vadd.f32 %v618_v0, %v1690_v62  ;;  %v1698_v11 = vpop.f32.mrb[15].mxu1  ;;  %v1700_v12 = vpop.f32.mrb[15].mxu0 }
  0xff   :  { %v698_v13 = vmul.f32 %v1690_v62, %v1690_v62  ;;  %v725_v14 = vmul.f32 %v1698_v11, %v1698_v11  ;;  %v699_v54 = vmul.f32 %v1700_v12, %v1700_v12  ;;  %v1708_v18 = vadd.f32 %v746_v63, %v692_v56 }
 0x100   :  { %v789_v22 = vadd.f32 %v788_v36, %v724_v7  ;;  %v654_v23 = vadd.f32 %v653_v6, %v1698_v11  ;;  %v620_v0 = vadd.f32 %v619_v9, %v1700_v12 }
 0x101   :  { %v1712_v26 = vpop.f32.mrb[16].mxu1  ;;  %v1714_v29 = vpop.f32.mrb[16].mxu0  ;;  %v755_v30 = vadd.f32 %v754_v5, %v698_v13 }
 0x102   :  { %2167 = vst [vmem:[#allocation7_spill] sm:$0xff] %v1712_v26  ;;  %v1716_v31 = vadd.f32 %v789_v22, %v725_v14  ;;  %v662_v34 = vadd.f32 %v1562_v3, %v1712_v26  ;;  %v731_v44 = vmul.f32 %v1712_v26, %v1712_v26  ;;  %v628_v46 = vadd.f32 %v627_v15, %v1714_v29  ;;  %v1723_v36 = vpop.f32.mrb[17].mxu1  ;;  %v1725_v47 = vpop.f32.mrb[17].mxu0 }
 0x103   :  { %2168 = vst [vmem:[#allocation8_spill] sm:$0xff] %v1723_v36  ;;  %v705_v52 = vmul.f32 %v1714_v29, %v1714_v29  ;;  %v732_v5 = vmul.f32 %v1723_v36, %v1723_v36  ;;  %v706_v55 = vmul.f32 %v1725_v47, %v1725_v47  ;;  %v756_v56 = vadd.f32 %v755_v30, %v699_v54 }
 0x104   :  { %v798_v3 = vadd.f32 %v1568_v25, %v731_v44  ;;  %v1735_v58 = vadd.f32 %v662_v34, %v1723_v36  ;;  %v629_v15 = vadd.f32 %v628_v46, %v1725_v47 }
 0x105   :  { %v1738_v63 = vpop.f32.mrb[18].mxu1  ;;  %v1740_v6 = vpop.f32.mrb[18].mxu0  ;;  %v764_v7 = vadd.f32 %v763_v20, %v705_v52 }
 0x106   :  { %2169 = vst [vmem:[#allocation9_spill] sm:$0xff] %v1738_v63  ;;  %v1742_v9 = vadd.f32 %v798_v3, %v732_v5  ;;  %v671_v13 = vadd.f32 %v1576_v33, %v1738_v63  ;;  %v738_v14 = vmul.f32 %v1738_v63, %v1738_v63  ;;  %v637_v25 = vadd.f32 %v636_v35, %v1740_v6  ;;  %v1749_v54 = vpop.f32.mrb[19].mxu1  ;;  %v1751_v22 = vpop.f32.mrb[19].mxu0 }
 0x107   :  { %2170 = vst [vmem:[#allocation10_spill] sm:$0xff] %v1749_v54  ;;  %v712_v30 = vmul.f32 %v1740_v6, %v1740_v6  ;;  %v739_v20 = vmul.f32 %v1749_v54, %v1749_v54  ;;  %v765_v34 = vadd.f32 %v764_v7, %v706_v55  ;;  %v713_v35 = vmul.f32 %v1751_v22, %v1751_v22 }
 0x108   :  { %v807_v44 = vadd.f32 %v1582_v37, %v738_v14  ;;  %v1759_v33 = vadd.f32 %v671_v13, %v1749_v54  ;;  %v638_v46 = vadd.f32 %v637_v25, %v1751_v22 }
 0x109   :  { %v1764_v52 = vpop.f32.mrb[20].mxu0  ;;  %v1281_v5 = vpop.f32.mrb[20].mxu1  ;;  %v773_v3 = vadd.f32 %v1668_v42, %v712_v30 }
 0x10a   :  { %2171 = vst [vmem:[#allocation11_spill] sm:$0xff] %v1764_v52  ;;  %v1767_v63 = vadd.f32 %v807_v44, %v739_v20  ;;  %v646_v36 = vadd.f32 %v645_v60, %v1764_v52  ;;  %v719_v37 = vmul.f32 %v1764_v52, %v1764_v52  ;;  %564 = vst.msk [vmem:[#allocation2 + $0x68] sm:$0xff] %vm556_vm1, %v1281_v5  ;;  %v511_v55 = vpop.f32.mrb[21].mxu1  ;;  %v1773_v7 = vpop.f32.mrb[21].mxu0  ;;  %v621_v13 = vsel %vm556_vm1, %v1281_v5, 0.0 }
 0x10b   :  { %2172 = vst [vmem:[#allocation12_spill] sm:$0xff] %v1773_v7  ;;  %557 = vst.msk [vmem:[#allocation2 + $0x30] sm:$0xff] %vm556_vm1, %v511_v55  ;;  %v693_v14 = vmul.f32 %v511_v55, %v511_v55  ;;  %v622_v25 = vadd.f32 %v621_v13, %v620_v0  ;;  %v700_v54 = vmul.f32 %v1281_v5, %v1281_v5  ;;  %v612_v42 = vsel %vm556_vm1, %v511_v55, 0.0 }
 0x10c   :  { %v774_v30 = vadd.f32 %v773_v3, %v713_v35  ;;  %v647_v60 = vadd.f32 %v646_v36, %v1773_v7  ;;  %v782_v20 = vadd.f32 %v1692_v2, %v719_v37  ;;  %v720_v44 = vmul.f32 %v1773_v7, %v1773_v7 }
 0x10d   :  { %v1284_v26 = vpop.f32.mrb[22].mxu1  ;;  %623 = vadd.xlane.f32.xlu0 %v622_v25  ;;  %v1782_v52 = vpop.f32.mrb[22].mxu0  ;;  %v757_v48 = vsel %vm556_vm1, %v700_v54, 0.0  ;;  %v613_v39 = vadd.f32 %v612_v42, %v1686_v61  ;;  %v748_v0 = vsel %vm556_vm1, %v693_v14, 0.0 }
 0x10e   :  { %578 = vst.msk [vmem:[#allocation2 + $0xd8] sm:$0xff] %vm556_vm1, %v1284_v26  ;;  %v714_v35 = vmul.f32 %v1284_v26, %v1284_v26  ;;  %v655_v36 = vadd.f32 %v654_v23, %v1782_v52  ;;  %v521_v5 = vpop.f32.mrb[23].mxu1  ;;  %v758_v2 = vadd.f32 %v757_v48, %v756_v56  ;;  %v1789_v3 = vpop.f32.mrb[23].mxu0  ;;  %v726_v37 = vmul.f32 %v1782_v52, %v1782_v52 }
 0x10f   :  { %571 = vst.msk [vmem:[#allocation2 + $0xa0] sm:$0xff] %vm556_vm1, %v521_v5  ;;  %v707_v55 = vmul.f32 %v521_v5, %v521_v5  ;;  %v639_v54 = vsel %vm556_vm1, %v1284_v26, 0.0  ;;  %v749_v61 = vadd.f32 %v748_v0, %v1708_v18  ;;  %v630_v14 = vsel %vm556_vm1, %v521_v5, 0.0 }
 0x110   :  { %759 = vadd.xlane.f32.xlu1 %v758_v2  ;;  %v640_v13 = vadd.f32 %v639_v54, %v638_v46  ;;  %v775_v23 = vsel %vm556_vm1, %v714_v35, 0.0  ;;  %v656_v48 = vadd.f32 %v655_v36, %v1789_v3  ;;  %v631_v42 = vadd.f32 %v630_v14, %v629_v15 }
 0x111   :  { %v1287_v56 = vpop.f32.mrb[24].mxu1  ;;  %614 = vadd.xlane.f32.xlu0 %v613_v39  ;;  %v1799_v25 = vpop.f32.mrb[24].mxu0  ;;  %v766_v7 = vsel %vm556_vm1, %v707_v55, 0.0  ;;  %v776_v10 = vadd.f32 %v775_v23, %v774_v30  ;;  %v783_v4 = vadd.f32 %v782_v20, %v720_v44  ;;  %v727_v15 = vmul.f32 %v1789_v3, %v1789_v3 }
 0x112   :  { %592 = vst.msk [vmem:[#allocation2 + $0x148] sm:$0xff] %vm556_vm1, %v1287_v56  ;;  %v728_v18 = vmul.f32 %v1287_v56, %v1287_v56  ;;  %v664_v26 = vadd.f32 %v1735_v58, %v1799_v25  ;;  %v733_v46 = vmul.f32 %v1799_v25, %v1799_v25  ;;  %v531_v0 = vpop.f32.mrb[25].mxu1  ;;  %v1807_v35 = vpop.f32.mrb[25].mxu0  ;;  %v767_v39 = vadd.f32 %v766_v7, %v765_v34 }
 0x113   :  { %2173 = vst [vmem:[#allocation13_spill] sm:$0xff] %v1807_v35  ;;  %585 = vst.msk [vmem:[#allocation2 + $0x110] sm:$0xff] %vm556_vm1, %v531_v0  ;;  %v721_v30 = vmul.f32 %v531_v0, %v531_v0  ;;  %v648_v20 = vsel %vm556_vm1, %v531_v0, 0.0  ;;  %v657_v44 = vsel %vm556_vm1, %v1287_v56, 0.0  ;;  %v734_v58 = vmul.f32 %v1807_v35, %v1807_v35 }
 0x114   :  { %641 = vadd.xlane.f32.xlu1 %v640_v13  ;;  %v649_v36 = vadd.f32 %v648_v20, %v647_v60  ;;  %v658_v5 = vadd.f32 %v657_v44, %v656_v48  ;;  %v791_v2 = vadd.f32 %v1716_v31, %v726_v37  ;;  %v793_v54 = vsel %vm556_vm1, %v728_v18, 0.0 }
 0x115   :  { %v1290_v55 = vpop.f32.mrb[26].mxu1  ;;  %750 = vadd.xlane.f32.xlu0 %v749_v61  ;;  %v1817_v34 = vpop.f32.mrb[26].mxu0  ;;  %v784_v7 = vsel %vm556_vm1, %v721_v30, 0.0  ;;  %v665_v14 = vadd.f32 %v664_v26, %v1807_v35  ;;  %v800_v23 = vadd.f32 %v1742_v9, %v733_v46 }
 0x116   :  { %2174 = vst [vmem:[#allocation14_spill] sm:$0xff] %v1817_v34  ;;  %606 = vst.msk [vmem:[#allocation2 + $0x1b8] sm:$0xff] %vm556_vm1, %v1290_v55  ;;  %v742_v13 = vmul.f32 %v1290_v55, %v1290_v55  ;;  %v673_v60 = vadd.f32 %v1759_v33, %v1817_v34  ;;  %v740_v31 = vmul.f32 %v1817_v34, %v1817_v34  ;;  %v541_v37 = vpop.f32.mrb[27].mxu1  ;;  %v1828_v61 = vpop.f32.mrb[27].mxu0  ;;  %v675_v0 = vsel %vm556_vm1, %v1290_v55, 0.0 }
 0x117   :  { %v785_v48 = vadd.f32 %v784_v7, %v783_v4  ;;  %599 = vst.msk [vmem:[#allocation2 + $0x180] sm:$0xff] %vm556_vm1, %v541_v37  ;;  %v666_v56 = vsel %vm556_vm1, %v541_v37, 0.0  ;;  %v735_v18 = vmul.f32 %v541_v37, %v541_v37  ;;  %v741_v9 = vmul.f32 %v1828_v61, %v1828_v61 }
 0x118   :  { %v792_v26 = vadd.f32 %v791_v2, %v727_v15  ;;  %632 = vadd.xlane.f32.xlu1 %v631_v42  ;;  %v674_v46 = vadd.f32 %v673_v60, %v1828_v61  ;;  %v667_v33 = vadd.f32 %v666_v56, %v665_v14  ;;  %v801_v30 = vadd.f32 %v800_v23, %v734_v58 }
 0x119   :  { %768 = vadd.xlane.f32.xlu0 %v767_v39  ;;  %v802_v4 = vsel %vm556_vm1, %v735_v18, 0.0  ;;  %v809_v44 = vadd.f32 %v1767_v63, %v740_v31  ;;  %v811_v37 = vsel %vm556_vm1, %v742_v13, 0.0  ;;  %v1348_v39 = vmov 0  }
 0x11a   :  { %v794_v20 = vadd.f32 %v793_v54, %v792_v26  ;;  %v676_v7 = vadd.f32 %v675_v0, %v674_v46  ;;  %v803_v35 = vadd.f32 %v802_v4, %v801_v30  ;;  %1329 = vset.pattern.permute.xlu1 %v1348_v39  ;;  %1330 = vset.pattern.permute.xlu0 %v1348_v39 }
 0x11b   :  { %v810_v34 = vadd.f32 %v809_v44, %v741_v9 }
 0x11c   :  { %777 = vadd.xlane.f32.xlu1 %v776_v10 }
 0x11d   :  { %650 = vadd.xlane.f32.xlu0 %v649_v36  ;;  %v812_v42 = vadd.f32 %v811_v37, %v810_v34 }
 0x120   :  { %659 = vadd.xlane.f32.xlu1 %v658_v5 }
 0x121   :  { %786 = vadd.xlane.f32.xlu0 %v785_v48 }
 0x124   :  { %795 = vadd.xlane.f32.xlu1 %v794_v20 }
 0x125   :  { %668 = vadd.xlane.f32.xlu0 %v667_v33 }
 0x128   :  { %677 = vadd.xlane.f32.xlu1 %v676_v7 }
 0x129   :  { %804 = vadd.xlane.f32.xlu0 %v803_v35 }
 0x12c   :  { %813 = vadd.xlane.f32.xlu1 %v812_v42 }
 0x19a   :  { %v624_v15 = vpop.xlane.xlu0 %623 }
 0x19b   :  { %v824_v63 = vmul.f32 0.0012755102, %v624_v15 }
 0x19d   :  { %v840_v58 = vmul.f32 %v824_v63, %v824_v63  ;;  %v760_v2 = vpop.xlane.xlu1 %759 }
 0x19e   :  { %v832_v55 = vmul.f32 0.0012755102, %v760_v2  ;;  %v615_v54 = vpop.xlane.xlu0 %614 }
 0x19f   :  { %v1839_v14 = vmul.f32 0.0012755102, %v615_v54 }
 0x1a0   :  { %v848_v10 = vsub.f32 %v832_v55, %v840_v58  ;;  %v864_v55 = vld [vmem:[%s2148_s2 + $0x8] sm:$0xff] }
 0x1a1   :  { %v642_v36 = vpop.xlane.xlu1 %641  ;;  %v839_v23 = vmul.f32 %v1839_v14, %v1839_v14 }
 0x1a2   :  { %v856_v5 = vmax.f32 %v848_v10, 0.0  ;;  %v751_v34 = vpop.xlane.xlu0 %750  ;;  %v1843_v48 = vmul.f32 0.0012755102, %v642_v36 }
 0x1a3   :  { %v831_v35 = vmul.f32 0.0012755102, %v751_v34 }
 0x1a4   :  { %v872_v13 = vadd.f32 1e-05, %v856_v5  ;;  %v842_v30 = vmul.f32 %v1843_v48, %v1843_v48 }
 0x1a5   :  { %v847_v60 = vsub.f32 %v831_v35, %v839_v23  ;;  %v633_v31 = vpop.xlane.xlu1 %632 }
 0x1a6   :  { %1331 = vrsqrt.f32 %v872_v13  ;;  %v1845_v56 = vmul.f32 0.0012755102, %v633_v31  ;;  %v769_v18 = vpop.xlane.xlu0 %768 }
 0x1a7   :  { %v855_v9 = vmax.f32 %v847_v60, 0.0  ;;  %v833_v26 = vmul.f32 0.0012755102, %v769_v18  ;;  %v863_v18 = vld [vmem:[%s2148_s2] sm:$0xff] }
 0x1a8   :  { %v841_v46 = vmul.f32 %v1845_v56, %v1845_v56 }
 0x1a9   :  { %v871_v33 = vadd.f32 1e-05, %v855_v9  ;;  %v778_v0 = vpop.xlane.xlu1 %777 }
 0x1aa   :  { %v849_v20 = vsub.f32 %v833_v26, %v841_v46  ;;  %v834_v4 = vmul.f32 0.0012755102, %v778_v0  ;;  %v651_v44 = vpop.xlane.xlu0 %650 }
 0x1ab   :  { %1333 = vrsqrt.f32 %v871_v33  ;;  %v1851_v15 = vmul.f32 0.0012755102, %v651_v44 }
 0x1ac   :  { %v857_v7 = vmax.f32 %v849_v20, 0.0  ;;  %v850_v37 = vsub.f32 %v834_v4, %v842_v30 }
 0x1ad   :  { %v660_v42 = vpop.xlane.xlu1 %659  ;;  %v843_v35 = vmul.f32 %v1851_v15, %v1851_v15 }
 0x1ae   :  { %v858_v39 = vmax.f32 %v850_v37, 0.0  ;;  %v1853_v58 = vmul.f32 0.0012755102, %v660_v42  ;;  %v787_v2 = vpop.xlane.xlu0 %786  ;;  %v873_v10 = vadd.f32 1e-05, %v857_v7  ;;  %v896_v37 = vld [vmem:[%s2149_s3 + $0x8] sm:$0xff] }
 0x1af   :  { %v835_v5 = vmul.f32 0.0012755102, %v787_v2 }
 0x1b0   :  { %v1332_v54 = vpop.eup %1331  ;;  %v874_v36 = vadd.f32 1e-05, %v858_v39  ;;  %v844_v13 = vmul.f32 %v1853_v58, %v1853_v58 }
 0x1b1   :  { %v796_v34 = vpop.xlane.xlu1 %795  ;;  %v888_v23 = vmul.f32 %v1332_v54, %v864_v55  ;;  %v851_v9 = vsub.f32 %v835_v5, %v843_v35 }
 0x1b2   :  { %1335 = vrsqrt.f32 %v874_v36  ;;  %v836_v60 = vmul.f32 0.0012755102, %v796_v34  ;;  %v669_v31 = vpop.xlane.xlu0 %668 }
 0x1b3   :  { %982 = vperm.xlu1 %1329, %v888_v23   ;;  %1337 = vrsqrt.f32 %v873_v10  ;;  %v1865_v33 = vmul.f32 0.0012755102, %v669_v31  ;;  %v904_v7 = vmul.f32 %v888_v23, %v824_v63  ;;  %v859_v42 = vmax.f32 %v851_v9, 0.0  ;;  %v866_v63 = vld [vmem:[%s2148_s2 + $0x18] sm:$0xff] }
 0x1b4   :  { %v852_v26 = vsub.f32 %v836_v60, %v844_v13  ;;  %v898_v9 = vld [vmem:[%s2149_s3 + $0x18] sm:$0xff] }
 0x1b5   :  { %v1334_v46 = vpop.eup %1333  ;;  %v678_v0 = vpop.xlane.xlu1 %677  ;;  %v845_v55 = vmul.f32 %v1865_v33, %v1865_v33  ;;  %v912_v5 = vsub.f32 %v896_v37, %v904_v7  ;;  %v875_v23 = vadd.f32 1e-05, %v859_v42  ;;  %v895_v42 = vld [vmem:[%s2149_s3] sm:$0xff] }
 0x1b6   :  { %v860_v30 = vmax.f32 %v852_v26, 0.0  ;;  %v830_v20 = vmul.f32 0.0012755102, %v678_v0  ;;  %v805_v4 = vpop.xlane.xlu0 %804  ;;  %v887_v44 = vmul.f32 %v1334_v46, %v863_v18  ;;  %v865_v26 = vld [vmem:[%s2148_s2 + $0x10] sm:$0xff] }
 0x1b7   :  { %v837_v2 = vmul.f32 0.0012755102, %v805_v4 }
 0x1b8   :  { %v876_v39 = vadd.f32 1e-05, %v860_v30  ;;  %977 = vperm.xlu0 %1330, %v887_v44   ;;  %v846_v10 = vmul.f32 %v830_v20, %v830_v20  ;;  %v903_v37 = vmul.f32 %v887_v44, %v1839_v14 }
 0x1b9   :  { %v814_v54 = vpop.xlane.xlu1 %813  ;;  %v853_v35 = vsub.f32 %v837_v2, %v845_v55 }
 0x1ba   :  { %1339 = vrsqrt.f32 %v876_v39  ;;  %v838_v36 = vmul.f32 0.0012755102, %v814_v54  ;;  %v868_v39 = vld [vmem:[%s2148_s2 + $0x28] sm:$0xff]  ;;  %v911_v55 = vsub.f32 %v895_v42, %v903_v37 }
 0x1bb   :  { %1341 = vrsqrt.f32 %v875_v23  ;;  %v861_v0 = vmax.f32 %v853_v35, 0.0 }
 0x1bc   :  { %v1336_v34 = vpop.eup %1335  ;;  %v854_v13 = vsub.f32 %v838_v36, %v846_v10  ;;  %1078 = vperm.xlu0 %1330, %v912_v5   ;;  %v900_v10 = vld [vmem:[%s2149_s3 + $0x28] sm:$0xff]  ;;  %v867_v5 = vld [vmem:[%s2148_s2 + $0x20] sm:$0xff] }
 0x1bd   :  { %v890_v60 = vmul.f32 %v1336_v34, %v866_v63  ;;  %v1338_v31 = vpop.eup %1337  ;;  %v870_v63 = vld [vmem:[%s2148_s2 + $0x38] sm:$0xff] }
 0x1be   :  { %v862_v18 = vmax.f32 %v854_v13, 0.0  ;;  %v889_v7 = vmul.f32 %v1338_v31, %v865_v26 }
 0x1bf   :  { %992 = vperm.xlu1 %1329, %v890_v60   ;;  %v906_v46 = vmul.f32 %v890_v60, %v1843_v48  ;;  %v877_v48 = vadd.f32 1e-05, %v861_v0  ;;  %v902_v60 = vld [vmem:[%s2149_s3 + $0x38] sm:$0xff] }
 0x1c0   :  { %v878_v30 = vadd.f32 1e-05, %v862_v18  ;;  %v905_v35 = vmul.f32 %v889_v7, %v1845_v56 }
 0x1c1   :  { %v914_v4 = vsub.f32 %v898_v9, %v906_v46  ;;  %v869_v46 = vld [vmem:[%s2148_s2 + $0x30] sm:$0xff] }
 0x1c2   :  { %1343 = vrsqrt.f32 %v878_v30  ;;  %v899_v30 = vld [vmem:[%s2149_s3 + $0x20] sm:$0xff] }
 0x1c3   :  { %1088 = vperm.xlu0 %1330, %v914_v4   ;;  %987 = vperm.xlu1 %1329, %v889_v7   ;;  %1345 = vrsqrt.f32 %v877_v48  ;;  %v901_v7 = vld [vmem:[%s2149_s3 + $0x30] sm:$0xff] }
 0x1c4   :  { %v1340_v2 = vpop.eup %1339 }
 0x1c5   :  { %v892_v54 = vmul.f32 %v1340_v2, %v868_v39  ;;  %v1342_v36 = vpop.eup %1341  ;;  %v932_v2 = vld [vmem:[#allocation2 + $0x68] sm:$0xff] }
 0x1c6   :  { %v891_v23 = vmul.f32 %v1342_v36, %v867_v5 }
 0x1c7   :  { %1073 = vperm.xlu1 %1329, %v911_v55   ;;  %v908_v14 = vmul.f32 %v892_v54, %v1853_v58  ;;  %v897_v58 = vld [vmem:[%s2149_s3 + $0x10] sm:$0xff] }
 0x1c8   :  { %v913_v18 = vsub.f32 %v897_v58, %v905_v35  ;;  %v907_v0 = vmul.f32 %v891_v23, %v1851_v15 }
 0x1c9   :  { %v916_v44 = vsub.f32 %v900_v10, %v908_v14 }
 0x1ca   :  { %v915_v4 = vsub.f32 %v899_v30, %v907_v0 }
 0x1cb   :  { %1098 = vperm.xlu0 %1330, %v916_v44   ;;  %1002 = vperm.xlu1 %1329, %v892_v54  }
 0x1cc   :  { %v1344_v34 = vpop.eup %1343 }
 0x1cd   :  { %v894_v13 = vmul.f32 %v1344_v34, %v870_v63  ;;  %v1346_v26 = vpop.eup %1345 }
 0x1ce   :  { %v893_v56 = vmul.f32 %v1346_v26, %v869_v46 }
 0x1cf   :  { %997 = vperm.xlu1 %1329, %v891_v23   ;;  %v910_v31 = vmul.f32 %v894_v13, %v830_v20 }
 0x1d0   :  { %v909_v20 = vmul.f32 %v893_v56, %v1865_v33 }
 0x1d1   :  { %v918_v9 = vsub.f32 %v902_v60, %v910_v31 }
 0x1d2   :  { %v917_v37 = vsub.f32 %v901_v7, %v909_v20 }
 0x1d3   :  { %1083 = vperm.xlu1 %1329, %v913_v18   ;;  %1108 = vperm.xlu0 %1330, %v918_v9  }
 0x1d7   :  { %1007 = vperm.xlu1 %1329, %v893_v56  }
 0x1db   :  { %1093 = vperm.xlu1 %1329, %v915_v4  }
 0x1df   :  { %1012 = vperm.xlu1 %1329, %v894_v13  }
 0x1e3   :  { %1103 = vperm.xlu1 %1329, %v917_v37  }
 0x232   :  { %v983_v42 = vpop.permute.xlu1 %982 }
 0x233   :  { %v1022_v15 = vmul.f32 %v983_v42, %v1570_v28  ;;  %v1023_v48 = vmul.f32 %v983_v42, %v1574_v32  ;;  %v1024_v55 = vmul.f32 %v983_v42, %v1604_v51  ;;  %v1025_v54 = vmul.f32 %v983_v42, %v1611_v57  ;;  %v946_v32 = vld [vmem:[#allocation2 + $0xd8] sm:$0xff] }
 0x234   :  { %v1026_v33 = vmul.f32 %v983_v42, %v1690_v62  ;;  %v1027_v10 = vmul.f32 %v983_v42, %v1700_v12  ;;  %v1028_v14 = vmul.f32 %v983_v42, %v932_v2 }
 0x237   :  { %v978_v39 = vpop.permute.xlu0 %977 }
 0x23b   :  { %v1079_v44 = vpop.permute.xlu0 %1078 }
 0x23c   :  { %v1118_v36 = vadd.f32 %v1079_v44, %v1022_v15  ;;  %v1119_v5 = vadd.f32 %v1079_v44, %v1023_v48  ;;  %v1120_v63 = vadd.f32 %v1079_v44, %v1024_v55  ;;  %v1121_v34 = vadd.f32 %v1079_v44, %v1025_v54  ;;  %v960_v15 = vld [vmem:[#allocation2 + $0x148] sm:$0xff] }
 0x23d   :  { %v1122_v23 = vadd.f32 %v1079_v44, %v1026_v33  ;;  %v1123_v35 = vadd.f32 %v1079_v44, %v1027_v10  ;;  %v1124_v13 = vadd.f32 %v1079_v44, %v1028_v14 }
 0x23e   :  { %1174 = vst [vmem:[%s2150_s4 + $0x38] sm:$0xff] %v1118_v36  ;;  %1175 = vst [vmem:[%s2150_s4 + $0x40] sm:$0xff] %v1119_v5  ;;  %v993_v28 = vpop.permute.xlu1 %992 }
 0x23f   :  { %1176 = vst [vmem:[%s2150_s4 + $0x48] sm:$0xff] %v1120_v63  ;;  %1177 = vst [vmem:[%s2150_s4 + $0x50] sm:$0xff] %v1121_v34  ;;  %v1036_v51 = vmul.f32 %v993_v28, %v1606_v53  ;;  %v1037_v57 = vmul.f32 %v993_v28, %v1615_v59  ;;  %v1038_v62 = vmul.f32 %v993_v28, %v1644_v16  ;;  %v925_v59 = vld [vmem:[#allocation2 + $0x30] sm:$0xff] }
 0x240   :  { %1178 = vst [vmem:[%s2150_s4 + $0x58] sm:$0xff] %v1122_v23  ;;  %1179 = vst [vmem:[%s2150_s4 + $0x60] sm:$0xff] %v1123_v35  ;;  %v1039_v12 = vmul.f32 %v993_v28, %v1651_v24  ;;  %v1040_v58 = vmul.f32 %v993_v28, %v1740_v6  ;;  %v1041_v60 = vmul.f32 %v993_v28, %v1751_v22 }
 0x241   :  { %1180 = vst.msk [vmem:[%s2150_s4 + $0x68] sm:$0xff] %vm556_vm1, %v1124_v13  ;;  %v1042_v31 = vmul.f32 %v993_v28, %v946_v32  ;;  %v1015_v16 = vmul.f32 %v978_v39, %v1556_v17  ;;  %v1016_v24 = vmul.f32 %v978_v39, %v1560_v21  ;;  %v1017_v6 = vmul.f32 %v978_v39, %v1584_v38 }
 0x242   :  { %v1089_v18 = vpop.permute.xlu0 %1088  ;;  %v1951_v9 = vpop.permute.xlu1 %987  ;;  %v1018_v22 = vmul.f32 %v978_v39, %v1591_v43  ;;  %v1019_v17 = vmul.f32 %v978_v39, %v1666_v41  ;;  %v1020_v21 = vmul.f32 %v978_v39, %v1676_v49  ;;  %v1021_v38 = vmul.f32 %v978_v39, %v925_v59  ;;  %v2180_v59 = vld [vmem:[#allocation12_spill] sm:$0xff] }
 0x243   :  { %v1132_v26 = vadd.f32 %v1089_v18, %v1036_v51  ;;  %v1133_v46 = vadd.f32 %v1089_v18, %v1037_v57  ;;  %v1134_v56 = vadd.f32 %v1089_v18, %v1038_v62  ;;  %v1135_v0 = vadd.f32 %v1089_v18, %v1039_v12 }
 0x244   :  { %v1136_v30 = vadd.f32 %v1089_v18, %v1040_v58  ;;  %v1137_v53 = vadd.f32 %v1089_v18, %v1041_v60  ;;  %v1138_v4 = vadd.f32 %v1089_v18, %v1042_v31  ;;  %v1033_v32 = vmul.f32 %v1951_v9, %v1714_v29  ;;  %v2175_v29 = vld [vmem:[#allocation3_spill] sm:$0xff] }
 0x245   :  { %1188 = vst [vmem:[%s2150_s4 + $0xa8] sm:$0xff] %v1132_v26  ;;  %1189 = vst [vmem:[%s2150_s4 + $0xb0] sm:$0xff] %v1133_v46  ;;  %v1034_v51 = vmul.f32 %v1951_v9, %v1725_v47  ;;  %v2177_v46 = vld [vmem:[#allocation5_spill] sm:$0xff] }
 0x246   :  { %1190 = vst [vmem:[%s2150_s4 + $0xb8] sm:$0xff] %v1134_v56  ;;  %1191 = vst [vmem:[%s2150_s4 + $0xc0] sm:$0xff] %v1135_v0  ;;  %v1074_v43 = vpop.permute.xlu1 %1073  ;;  %v2178_v0 = vld [vmem:[#allocation6_spill] sm:$0xff] }
 0x247   :  { %1192 = vst [vmem:[%s2150_s4 + $0xc8] sm:$0xff] %v1136_v30  ;;  %1193 = vst [vmem:[%s2150_s4 + $0xd0] sm:$0xff] %v1137_v53  ;;  %v1111_v20 = vadd.f32 %v1074_v43, %v1015_v16  ;;  %v1112_v7 = vadd.f32 %v1074_v43, %v1016_v24  ;;  %v1113_v41 = vadd.f32 %v1074_v43, %v1017_v6  ;;  %v2179_v53 = vld [vmem:[#allocation11_spill] sm:$0xff] }
 0x248   :  { %1194 = vst.msk [vmem:[%s2150_s4 + $0xd8] sm:$0xff] %vm556_vm1, %v1138_v4  ;;  %v1114_v37 = vadd.f32 %v1074_v43, %v1018_v22  ;;  %v1115_v49 = vadd.f32 %v1074_v43, %v1019_v17  ;;  %v1116_v42 = vadd.f32 %v1074_v43, %v1020_v21  ;;  %v1117_v39 = vadd.f32 %v1074_v43, %v1021_v38 }
 0x249   :  { %1167 = vst [vmem:[%s2150_s4] sm:$0xff] %v1111_v20  ;;  %1168 = vst [vmem:[%s2150_s4 + $0x8] sm:$0xff] %v1112_v7 }
 0x24a   :  { %1169 = vst [vmem:[%s2150_s4 + $0x10] sm:$0xff] %v1113_v41  ;;  %1170 = vst [vmem:[%s2150_s4 + $0x18] sm:$0xff] %v1114_v37  ;;  %v1003_v2 = vpop.permute.xlu1 %1002  ;;  %v1099_v10 = vpop.permute.xlu0 %1098  ;;  %v961_v41 = vld [vmem:[#allocation2 + $0x150] sm:$0xff]  ;;  %v962_v37 = vld [vmem:[#allocation2 + $0x158] sm:$0xff] }
 0x24b   :  { %1171 = vst [vmem:[%s2150_s4 + $0x20] sm:$0xff] %v1115_v49  ;;  %1172 = vst [vmem:[%s2150_s4 + $0x28] sm:$0xff] %v1116_v42  ;;  %v1050_v48 = vmul.f32 %v1003_v2, %v1646_v19  ;;  %v1051_v55 = vmul.f32 %v1003_v2, %v1655_v27  ;;  %v1052_v54 = vmul.f32 %v1003_v2, %v1688_v50  ;;  %v939_v27 = vld [vmem:[#allocation2 + $0xa0] sm:$0xff]  ;;  %v968_v42 = vld [vmem:[#allocation2 + $0x188] sm:$0xff] }
 0x24c   :  { %1173 = vst.msk [vmem:[%s2150_s4 + $0x30] sm:$0xff] %vm556_vm1, %v1117_v39  ;;  %v1053_v33 = vmul.f32 %v1003_v2, %v1698_v11  ;;  %v1054_v14 = vmul.f32 %v1003_v2, %v1782_v52  ;;  %v1055_v44 = vmul.f32 %v1003_v2, %v1789_v3  ;;  %v1056_v36 = vmul.f32 %v1003_v2, %v960_v15  ;;  %v969_v39 = vld [vmem:[#allocation2 + $0x190] sm:$0xff] }
 0x24d   :  { %v1146_v5 = vadd.f32 %v1099_v10, %v1050_v48  ;;  %v1147_v63 = vadd.f32 %v1099_v10, %v1051_v55  ;;  %v1148_v34 = vadd.f32 %v1099_v10, %v1052_v54  ;;  %v1029_v50 = vmul.f32 %v1951_v9, %v1586_v40  ;;  %v2181_v48 = vld [vmem:[#allocation7_spill] sm:$0xff]  ;;  %v2182_v54 = vld [vmem:[#allocation8_spill] sm:$0xff] }
 0x24e   :  { %v1149_v23 = vadd.f32 %v1099_v10, %v1053_v33  ;;  %v1150_v35 = vadd.f32 %v1099_v10, %v1054_v14  ;;  %v1151_v13 = vadd.f32 %v1099_v10, %v1055_v44  ;;  %v1152_v28 = vadd.f32 %v1099_v10, %v1056_v36  ;;  %v998_v19 = vpop.permute.xlu1 %997  ;;  %v974_v14 = vld [vmem:[#allocation2 + $0x1b8] sm:$0xff] }
 0x24f   :  { %1202 = vst [vmem:[%s2150_s4 + $0x118] sm:$0xff] %v1146_v5  ;;  %1203 = vst [vmem:[%s2150_s4 + $0x120] sm:$0xff] %v1147_v63  ;;  %v1030_v11 = vmul.f32 %v1951_v9, %v1595_v45  ;;  %v1031_v52 = vmul.f32 %v1951_v9, %v1624_v1  ;;  %v1032_v3 = vmul.f32 %v1951_v9, %v1631_v8  ;;  %v953_v8 = vld [vmem:[#allocation2 + $0x110] sm:$0xff] }
 0x250   :  { %1204 = vst [vmem:[%s2150_s4 + $0x128] sm:$0xff] %v1148_v34  ;;  %1205 = vst [vmem:[%s2150_s4 + $0x130] sm:$0xff] %v1149_v23  ;;  %v1035_v57 = vmul.f32 %v1951_v9, %v939_v27  ;;  %v1043_v47 = vmul.f32 %v998_v19, %v2175_v29  ;;  %v2176_v9 = vld [vmem:[#allocation4_spill] sm:$0xff]  ;;  %v1045_v56 = vmul.f32 %v998_v19, %v2177_v46  ;;  %v2183_v5 = vld [vmem:[#allocation9_spill] sm:$0xff] }
 0x251   :  { %1206 = vst [vmem:[%s2150_s4 + $0x138] sm:$0xff] %v1150_v35  ;;  %1207 = vst [vmem:[%s2150_s4 + $0x140] sm:$0xff] %v1151_v13  ;;  %v1044_v26 = vmul.f32 %v998_v19, %v2176_v9  ;;  %v1046_v30 = vmul.f32 %v998_v19, %v2178_v0  ;;  %v1047_v4 = vmul.f32 %v998_v19, %v2179_v53  ;;  %v2184_v34 = vld [vmem:[#allocation10_spill] sm:$0xff] }
 0x252   :  { %1208 = vst.msk [vmem:[%s2150_s4 + $0x148] sm:$0xff] %vm556_vm1, %v1152_v28  ;;  %v1084_v62 = vpop.permute.xlu1 %1083  ;;  %v1048_v16 = vmul.f32 %v998_v19, %v2180_v59  ;;  %v1049_v24 = vmul.f32 %v998_v19, %v953_v8  ;;  %v1109_v35 = vpop.permute.xlu0 %1108  ;;  %v2185_v13 = vld [vmem:[#allocation14_spill] sm:$0xff] }
 0x253   :  { %v1125_v12 = vadd.f32 %v1084_v62, %v1029_v50  ;;  %v1126_v40 = vadd.f32 %v1084_v62, %v1030_v11  ;;  %v1127_v58 = vadd.f32 %v1084_v62, %v1031_v52  ;;  %v1128_v60 = vadd.f32 %v1084_v62, %v1032_v3  ;;  %v2186_v50 = vld [vmem:[#allocation13_spill] sm:$0xff] }
 0x254   :  { %v1129_v45 = vadd.f32 %v1084_v62, %v1033_v32  ;;  %v1130_v31 = vadd.f32 %v1084_v62, %v1034_v51  ;;  %v1131_v18 = vadd.f32 %v1084_v62, %v1035_v57 }
 0x255   :  { %1181 = vst [vmem:[%s2150_s4 + $0x70] sm:$0xff] %v1125_v12  ;;  %1182 = vst [vmem:[%s2150_s4 + $0x78] sm:$0xff] %v1126_v40 }
 0x256   :  { %1183 = vst [vmem:[%s2150_s4 + $0x80] sm:$0xff] %v1127_v58  ;;  %1184 = vst [vmem:[%s2150_s4 + $0x88] sm:$0xff] %v1128_v60  ;;  %v1008_v1 = vpop.permute.xlu1 %1007 }
 0x257   :  { %1185 = vst [vmem:[%s2150_s4 + $0x90] sm:$0xff] %v1129_v45  ;;  %1186 = vst [vmem:[%s2150_s4 + $0x98] sm:$0xff] %v1130_v31  ;;  %v1057_v49 = vmul.f32 %v1008_v1, %v961_v41  ;;  %v1058_v15 = vmul.f32 %v1008_v1, %v962_v37  ;;  %v1059_v55 = vmul.f32 %v1008_v1, %v2181_v48 }
 0x258   :  { %1187 = vst.msk [vmem:[%s2150_s4 + $0xa0] sm:$0xff] %vm556_vm1, %v1131_v18  ;;  %v1060_v33 = vmul.f32 %v1008_v1, %v2182_v54  ;;  %v1061_v10 = vmul.f32 %v1008_v1, %v1799_v25  ;;  %v1062_v11 = vmul.f32 %v1008_v1, %v2186_v50  ;;  %v967_v25 = vld [vmem:[#allocation2 + $0x180] sm:$0xff] }
 0x259   :  { %v1063_v40 = vmul.f32 %v1008_v1, %v967_v25 }
 0x25a   :  { %v1094_v6 = vpop.permute.xlu1 %1093 }
 0x25b   :  { %v1139_v22 = vadd.f32 %v1094_v6, %v1043_v47  ;;  %v1140_v17 = vadd.f32 %v1094_v6, %v1044_v26  ;;  %v1141_v21 = vadd.f32 %v1094_v6, %v1045_v56  ;;  %v1142_v38 = vadd.f32 %v1094_v6, %v1046_v30 }
 0x25c   :  { %v1143_v43 = vadd.f32 %v1094_v6, %v1047_v4  ;;  %v1144_v20 = vadd.f32 %v1094_v6, %v1048_v16  ;;  %v1145_v7 = vadd.f32 %v1094_v6, %v1049_v24 }
 0x25d   :  { %1195 = vst [vmem:[%s2150_s4 + $0xe0] sm:$0xff] %v1139_v22  ;;  %1196 = vst [vmem:[%s2150_s4 + $0xe8] sm:$0xff] %v1140_v17 }
 0x25e   :  { %1197 = vst [vmem:[%s2150_s4 + $0xf0] sm:$0xff] %v1141_v21  ;;  %1198 = vst [vmem:[%s2150_s4 + $0xf8] sm:$0xff] %v1142_v38  ;;  %v1013_v2 = vpop.permute.xlu1 %1012 }
 0x25f   :  { %1199 = vst [vmem:[%s2150_s4 + $0x100] sm:$0xff] %v1143_v43  ;;  %1200 = vst [vmem:[%s2150_s4 + $0x108] sm:$0xff] %v1144_v20  ;;  %v1064_v44 = vmul.f32 %v1013_v2, %v968_v42  ;;  %v1065_v36 = vmul.f32 %v1013_v2, %v969_v39  ;;  %v1066_v63 = vmul.f32 %v1013_v2, %v2183_v5 }
 0x260   :  { %1201 = vst.msk [vmem:[%s2150_s4 + $0x110] sm:$0xff] %vm556_vm1, %v1145_v7  ;;  %v1067_v23 = vmul.f32 %v1013_v2, %v2184_v34  ;;  %v1068_v28 = vmul.f32 %v1013_v2, %v2185_v13  ;;  %v1069_v19 = vmul.f32 %v1013_v2, %v1828_v61  ;;  %v1070_v27 = vmul.f32 %v1013_v2, %v974_v14 }
 0x261   :  { %v1160_v52 = vadd.f32 %v1109_v35, %v1064_v44  ;;  %v1161_v3 = vadd.f32 %v1109_v35, %v1065_v36  ;;  %v1162_v32 = vadd.f32 %v1109_v35, %v1066_v63 }
 0x262   :  { %v1163_v51 = vadd.f32 %v1109_v35, %v1067_v23  ;;  %v1164_v57 = vadd.f32 %v1109_v35, %v1068_v28  ;;  %v1165_v62 = vadd.f32 %v1109_v35, %v1069_v19  ;;  %v1166_v12 = vadd.f32 %v1109_v35, %v1070_v27  ;;  %v1104_v58 = vpop.permute.xlu1 %1103 }
 0x263   :  { %1216 = vst [vmem:[%s2150_s4 + $0x188] sm:$0xff] %v1160_v52  ;;  %1217 = vst [vmem:[%s2150_s4 + $0x190] sm:$0xff] %v1161_v3  ;;  %v1153_v61 = vadd.f32 %v1104_v58, %v1057_v49  ;;  %v1154_v60 = vadd.f32 %v1104_v58, %v1058_v15  ;;  %v1155_v45 = vadd.f32 %v1104_v58, %v1059_v55 }
 0x264   :  { %1218 = vst [vmem:[%s2150_s4 + $0x198] sm:$0xff] %v1162_v32  ;;  %1219 = vst [vmem:[%s2150_s4 + $0x1a0] sm:$0xff] %v1163_v51  ;;  %v1156_v31 = vadd.f32 %v1104_v58, %v1060_v33  ;;  %v1157_v18 = vadd.f32 %v1104_v58, %v1061_v10  ;;  %v1158_v1 = vadd.f32 %v1104_v58, %v1062_v11 }
 0x265   :  { %1220 = vst [vmem:[%s2150_s4 + $0x1a8] sm:$0xff] %v1164_v57  ;;  %1221 = vst [vmem:[%s2150_s4 + $0x1b0] sm:$0xff] %v1165_v62  ;;  %v1159_v8 = vadd.f32 %v1104_v58, %v1063_v40 }
 0x266   :  { %1222 = vst.msk [vmem:[%s2150_s4 + $0x1b8] sm:$0xff] %vm556_vm1, %v1166_v12  ;;  %1209 = vst [vmem:[%s2150_s4 + $0x150] sm:$0xff] %v1153_v61 }
 0x267   :  { %1210 = vst [vmem:[%s2150_s4 + $0x158] sm:$0xff] %v1154_v60  ;;  %1211 = vst [vmem:[%s2150_s4 + $0x160] sm:$0xff] %v1155_v45 }
 0x268   :  { %1212 = vst [vmem:[%s2150_s4 + $0x168] sm:$0xff] %v1156_v31  ;;  %1213 = vst [vmem:[%s2150_s4 + $0x170] sm:$0xff] %v1157_v18 }
 0x269   :  { %1214 = vst [vmem:[%s2150_s4 + $0x178] sm:$0xff] %v1158_v1  ;;  %1215 = vst.msk [vmem:[%s2150_s4 + $0x180] sm:$0xff] %vm556_vm1, %v1159_v8 }

</bundles_post_ra>
